<compile_context>
chip_gen: v7x
topology: tpu7x:2x2x1
jax: 0.10.0
libtpu: 0.0.40
codegen_flags: <defaults>
</compile_context>

<pallas_src>
import math

import jax
import jax.numpy as jnp
from jax.experimental import pallas as pl
from jax.experimental.pallas import tpu as pltpu


def _norm_kernel(x_ref, params_ref, o_ref):
    # (x - mean) / std  ==  x * (1/std) + (-mean/std)
    # params_ref is (2, W) float32: row 0 = scale, row 1 = shift; each (1, W)
    # slice broadcasts across the sublane (row) axis of the (tr, W) tile.
    x = x_ref[...].astype(jnp.float32)
    scale = params_ref[0:1, :]
    shift = params_ref[1:2, :]
    o_ref[...] = (x * scale + shift).astype(o_ref.dtype)


def norm_layer(state_embedding, mean, std, *, target_tile_bytes=4 << 20):
    """Apply (x - mean) / std with a Pallas TPU kernel.

    state_embedding: [..., D] (float32 or bf16)
    mean, std:       [D]      float32
    """
    orig_shape = state_embedding.shape
    orig_dtype = state_embedding.dtype
    D = orig_shape[-1]
    x2 = state_embedding.reshape(-1, D)
    B = x2.shape[0]

    # Affine parameters in float32 (tiny [D] work, once, outside the grid).
    mean_f32 = mean.astype(jnp.float32)
    std_f32 = std.astype(jnp.float32)
    scale = 1.0 / std_f32
    shift = -mean_f32 * scale

    # --- Lane-dense packing: make the last dim a multiple of 128 so every
    # store is a full-lane (unmasked) vst.  Pad the batch with dummy rows when
    # needed (<= lane_mult - 1 <= 127 rows of extra HBM traffic, dropped after).
    LANE = 128
    lane_mult = LANE // math.gcd(D, LANE)  # rows packed per output row
    B_pad = -(-B // lane_mult) * lane_mult
    if B_pad != B:
        x2 = jnp.pad(x2, ((0, B_pad - B), (0, 0)))
    R = B_pad // lane_mult
    W = D * lane_mult
    x2 = x2.reshape(R, W)
    if lane_mult > 1:
        scale_row = jnp.tile(scale, lane_mult)
        shift_row = jnp.tile(shift, lane_mult)
    else:
        scale_row, shift_row = scale, shift
    # Single merged grid-invariant operand: row 0 = scale, row 1 = shift.
    params = jnp.stack([scale_row, shift_row], axis=0)  # (2, W) float32

    # --- Row tiling from a VMEM budget (~target_tile_bytes per tile buffer).
    # Sublane pack depends on dtype (f32: 8, bf16: 16, 8-bit: 32).
    sub = max(8, (8 * 4) // jnp.dtype(orig_dtype).itemsize)
    row_bytes = W * jnp.dtype(orig_dtype).itemsize
    tr = max((target_tile_bytes // row_bytes) // sub * sub, sub)

    # Keep at least ~4 grid steps for non-trivial inputs so the pipeline can
    # overlap prefetch of tile i+1 / writeback of tile i-1 with compute on i.
    total_bytes = R * row_bytes
    if total_bytes > (1 << 20):
        min_steps = 4
        cap = (-(-R // min_steps) + sub - 1) // sub * sub
        tr = min(tr, max(cap, sub))
    if tr >= R:
        tr = R  # full-extent block (allowed exception to the sublane rule)
    grid = (pl.cdiv(R, tr),)

    out = pl.pallas_call(
        _norm_kernel,
        out_shape=jax.ShapeDtypeStruct((R, W), orig_dtype),
        grid_spec=pltpu.PrefetchScalarGridSpec(
            num_scalar_prefetch=0,
            grid=grid,
            in_specs=[
                pl.BlockSpec((tr, W), lambda i: (i, 0)),
                pl.BlockSpec((2, W), lambda i: (0, 0)),
            ],
            out_specs=pl.BlockSpec((tr, W), lambda i: (i, 0)),
        ),
        compiler_params=pltpu.CompilerParams(
            # Parallel row-tile axis: shards the grid across v7x's 2 TCs;
            # harmless on single-TC v5e/v6e.
            dimension_semantics=("parallel",),
            # Footprint ~= 2 bufs x (in + out) x ~4 MiB ~= 16 MiB + params;
            # 48 MiB leaves headroom and still fits under v7x's 64 MiB VMEM.
            vmem_limit_bytes=48 << 20,
        ),
    )(x2, params)

    out = out.reshape(B_pad, D)[:B]
    return out.reshape(orig_shape)


if __name__ == "__main__":
    key = jax.random.PRNGKey(0)
    k_x, k_m, k_s, k_x2 = jax.random.split(key, 4)

    batch = 8
    state_embedding_dim = 32

    x = jax.random.normal(k_x, (batch, state_embedding_dim), dtype=jnp.float32)
    # Nontrivial deterministic parameters so the kernel is actually exercised
    # (module defaults are zeros/ones).
    mean = jax.random.normal(k_m, (state_embedding_dim,), dtype=jnp.float32)
    std = jax.random.uniform(
        k_s, (state_embedding_dim,), dtype=jnp.float32, minval=0.5, maxval=1.5
    )

    out = norm_layer(x, mean, std)
    out = jax.block_until_ready(out)

    # Reference check in plain JAX.  The scale/shift FMA refactor introduces a
    # few-ULP drift vs (x - mean) / std, so use a slightly looser tolerance.
    ref = (x - mean[None, :]) / std[None, :]
    assert jnp.allclose(out, ref, atol=1e-5, rtol=1e-5), "mismatch vs reference"

    # Second check: leading-batch shape whose flattened row count forces the
    # lane-dense padding path (3 * 5 = 15 rows, lane_mult = 4 -> pad to 16).
    x_b = jax.random.normal(k_x2, (3, 5, state_embedding_dim), dtype=jnp.float32)
    out_b = jax.block_until_ready(norm_layer(x_b, mean, std))
    ref_b = (x_b - mean) / std
    assert jnp.allclose(out_b, ref_b, atol=1e-5, rtol=1e-5), "padded-path mismatch"

    print("KERNEL_OK")
</pallas_src>

<mosaic_0001>
module attributes {stable_mosaic.version = 11 : i64} {
  func.func @_norm_kernel(%arg0: i32, %arg1: memref<2x128xf32, #tpu.memory_space<vmem>>, %arg2: memref<2x128xf32, #tpu.memory_space<vmem>>, %arg3: memref<2x128xf32, #tpu.memory_space<vmem>>) attributes {dimension_semantics = [#tpu.dimension_semantics<parallel>], iteration_bounds = array<i64: 1>, scalar_prefetch = 0 : i64, scratch_operands = 0 : i64, tpu.core_type = #tpu.core_type<tc>, window_params = [{transform_indices = @transform_0, window_bounds = array<i64: 2, 128>}, {pipeline_mode = #tpu.pipeline_mode<synchronous>, transform_indices = @transform_1, window_bounds = array<i64: 2, 128>}, {transform_indices = @transform_2, window_bounds = array<i64: 2, 128>}]} {
    %c0 = arith.constant 0 : index
    %c0_0 = arith.constant 0 : index
    %0 = vector.load %arg1[%c0, %c0_0] : memref<2x128xf32, #tpu.memory_space<vmem>>, vector<2x128xf32>
    %c0_1 = arith.constant 0 : index
    %c0_2 = arith.constant 0 : index
    %1 = vector.load %arg2[%c0_1, %c0_2] : memref<2x128xf32, #tpu.memory_space<vmem>>, vector<1x128xf32>
    %c1 = arith.constant 1 : index
    %c0_3 = arith.constant 0 : index
    %2 = vector.load %arg2[%c1, %c0_3] : memref<2x128xf32, #tpu.memory_space<vmem>>, vector<1x128xf32>
    %3 = vector.broadcast %1 : vector<1x128xf32> to vector<2x128xf32>
    %4 = arith.mulf %0, %3 : vector<2x128xf32>
    %5 = vector.broadcast %2 : vector<1x128xf32> to vector<2x128xf32>
    %6 = arith.addf %4, %5 : vector<2x128xf32>
    %c0_4 = arith.constant 0 : index
    %c0_5 = arith.constant 0 : index
    %7 = vector.load %arg3[%c0_4, %c0_5] : memref<2x128xf32, #tpu.memory_space<vmem>>, vector<2x128xf32>
    tpu.vector_store %arg3[%c0_4, %c0_5], %6 {strides = array<i32>} : memref<2x128xf32, #tpu.memory_space<vmem>>, vector<2x128xf32>,
    return
  }
  func.func @transform_0(%arg0: i32) -> (i32, i32) {
    %c0_i32 = arith.constant 0 : i32
    %c0_i32_0 = arith.constant 0 : i32
    return %arg0, %c0_i32 : i32, i32
  }
  func.func @transform_1(%arg0: i32) -> (i32, i32) {
    %c0_i32 = arith.constant 0 : i32
    %c0_i32_0 = arith.constant 0 : i32
    %c0_i32_1 = arith.constant 0 : i32
    return %c0_i32, %c0_i32_0 : i32, i32
  }
  func.func @transform_2(%arg0: i32) -> (i32, i32) {
    %c0_i32 = arith.constant 0 : i32
    %c0_i32_0 = arith.constant 0 : i32
    return %arg0, %c0_i32 : i32, i32
  }
}

</mosaic_0001>

<bundles_post_ra>
// kernel: tpu_custom_call.1
= control target key start
LH: loop header
LB: loop body
LE: loop exit
PB: predicated region body
PF: predicated region fallthrough
CT: control target
= control target key end

     0   :  { %7 = vsyncpa [#allocation3], 0  ;;  %s152_s0 = inlined_call_operand.hbm [shape: f32[2,128], index: 0, kind: input, shape index: {}]   ;;  %s153_s1 = inlined_call_operand.vmem [shape: f32[2,128], index: 1, kind: input, shape index: {}]   ;;  %s154_s2 = inlined_call_operand.hbm [shape: f32[2,128], index: 2, kind: output, shape index: {}]  }
   0x1   :  { %8 = vsyncpa [#allocation4], 0  ;;  %s105_s9 = smov [#allocation2]   ;;  %s57_s13 = scalar_lea.hbm %s152_s0, 32 }
   0x2   :  { %s15_s10 = sshll.u32 %s105_s9, 4  ;;  %p58_p0 = scmp.ne.s32.totalorder %s152_s0, %s57_s13  ;;  %s16_s10 = int_to_ptr.vmem [resolvable:$true] %s15_s10 }
   0x3   :  { %p61_p1 = scmp.lt.u32.totalorder %s57_s13, %s152_s0 }
   0x5   :  { %p63_p2 = pnand %p61_p1, %p58_p0 }
   0x7   :  { %66 = shalt.err (!%p63_p2)
}
   0x8   :  { %s67_s18 = scalar_lea.vmem %s16_s10, 32  ;;  %p72_p4 = scmp.lt.s32.totalorder %s16_s10, %s16_s10 }
   0x9   :  { %p68_p3 = scmp.ne.s32.totalorder %s16_s10, %s67_s18  ;;  %p73_p5 = scmp.lt.s32.totalorder %s67_s18, %s67_s18 }
   0xb   :  { %p74_p6 = por %p73_p5, %p72_p4 }
   0xd   :  { %p75_p7 = pnand %p74_p6, %p68_p3 }
   0xf   :  { %78 = shalt.err (!%p75_p7)
}
  0x10   :  { %18 = dma.hbm_to_vmem [thread:$0]  %s152_s0, 32, %s16_s10, [#allocation3]  }
  0x11   :  { %101 = dma.done.wait [#allocation3], 32  }
  0x12   :  { %102 = vsyncadd [#allocation3], 4294967264  ;;  %s106_s21 = smov [#allocation5]   ;;  %v24_v0 = vld [vmem:[#allocation2] sm:$0x3] }
  0x13   :  { %s44_s22 = sshll.u32 %s106_s21, 4  ;;  %v53_v1 = vld [vmem:[%s153_s1] ss:$0 sm:$0xff]  ;;  %v54_v2 = vld [vmem:[%s153_s1 + $0x1] ss:$0 sm:$0xff]  ;;  %s45_s22 = int_to_ptr.vmem [resolvable:$true] %s44_s22 }
  0x14   :  { %v31_v3 = vmul.f32 %v53_v1, %v24_v0  ;;  %s79_s27 = scalar_lea.vmem %s45_s22, 32  ;;  %p84_p9 = scmp.lt.s32.totalorder %s45_s22, %s45_s22 }
  0x15   :  { %p80_p8 = scmp.ne.s32.totalorder %s45_s22, %s79_s27  ;;  %p85_p10 = scmp.lt.s32.totalorder %s79_s27, %s79_s27 }
  0x16   :  { %v36_v4 = vadd.f32 %v54_v2, %v31_v3 }
  0x17   :  { %p86_p11 = por %p85_p10, %p84_p9 }
  0x18   :  { %37 = vst [vmem:[#allocation5] sm:$0x3] %v36_v4 }
  0x19   :  { %p87_p12 = pnand %p86_p11, %p80_p8 }
  0x1b   :  { %90 = shalt.err (!%p87_p12)
}
  0x1c   :  { %s91_s29 = scalar_lea.hbm %s154_s2, 32 }
  0x1d   :  { %p92_p13 = scmp.ne.s32.totalorder %s154_s2, %s91_s29  ;;  %p95_p0 = scmp.lt.u32.totalorder %s91_s29, %s154_s2 }
  0x1f   :  { %p97_p1 = pnand %p95_p0, %p92_p13 }
  0x21   :  { %100 = shalt.err (!%p97_p1)
}
  0x22   :  { %47 = dma.vmem_to_hbm [thread:$0]  %s45_s22, 32, %s154_s2, [#allocation4]  }
  0x23   :  { %103 = dma.done.wait [#allocation4], 32  }
  0x24   :  { %104 = vsyncadd [#allocation4], 4294967264 }
  0x25   :  { %51 = vsyncpa [#allocation3], 1 }
  0x26   :  { %52 = vsyncpa [#allocation4], 1 }

</bundles_post_ra>
